<compile_context>
chip_gen: v7x
topology: tpu7x:2x2x1
jax: 0.10.0
libtpu: 0.0.40
codegen_flags: <defaults>
</compile_context>

<pallas_src>
import functools

import jax
import jax.numpy as jnp
from jax.experimental import pallas as pl
from jax.experimental.pallas import tpu as pltpu


def _round_up(x, m):
    return (x + m - 1) // m * m


def _pick_tile_h(Hu, s, wcinp, wucout, budget_bytes=4 << 20):
    """Largest row tile (divisor of Hu, multiple of s, 8-aligned) fitting VMEM."""
    def ok(th):
        lhs = th * 3 * wcinp * (4 + 2)      # f32 build + bf16 copy of the LHS
        acc = th * wucout * 4               # f32 accumulator
        out = 2 * th * wucout * 4           # double-buffered output block
        return lhs + acc + out <= budget_bytes

    divs = [d for d in range(Hu, 0, -1)
            if Hu % d == 0 and d % s == 0 and (d % 8 == 0 or d == Hu)]
    for d in divs:                          # prefer th_in = d/s multiple of 8
        if d % (8 * s) == 0 and ok(d):
            return d
    for d in divs:
        if ok(d):
            return d
    return divs[-1] if divs else Hu


def _resize_conv_kernel(x_ref, t_ref, b_ref, o_ref, *,
                        H, WCinP, WuCout, s, tile_h):
    """One (batch, row-tile) step.

    x_ref : (1, H, WCinP)            original-res, lane-flat NHWC rows (padded)
    t_ref : (3*WCinP, Wu*Cout)       bf16 banded weights (upsample+pad+kh+kw folded)
    b_ref : (1, Wu*Cout)             bias replicated per output column
    o_ref : (1, tile_h, Wu*Cout)     lane-dense output rows of this tile
    """
    r = pl.program_id(1)
    n_row = pl.num_programs(1)
    th_in = tile_h // s

    # ---- nearest H-upsample of this tile's rows (in registers) -------------
    start = r * th_in
    if th_in % 8 == 0:
        start = pl.multiple_of(start, 8)
    rows = x_ref[0, pl.ds(start, th_in), :]                    # (th_in, WCinP)
    if s > 1:
        up = jnp.broadcast_to(rows[:, None, :], (th_in, s, WCinP))
        up = up.reshape(tile_h, WCinP)                         # replicate rows s x
    else:
        up = rows

    # ---- 1-row conv halos (zero at the image top/bottom edge) --------------
    top = jnp.where(r > 0,
                    x_ref[0, pl.ds(jnp.maximum(r * th_in - 1, 0), 1), :],
                    0.0)                                       # (1, WCinP)
    bot = jnp.where(r < n_row - 1,
                    x_ref[0, pl.ds(jnp.minimum((r + 1) * th_in, H - 1), 1), :],
                    0.0)                                       # (1, WCinP)

    row_m1 = jnp.concatenate([top, up[:tile_h - 1, :]], axis=0)   # reads row h-1
    row_p1 = jnp.concatenate([up[1:, :], bot], axis=0)            # reads row h+1

    # ---- single MXU matmul: K = 3*WCinP (kh folded), N = Wu*Cout -----------
    lhs = jnp.concatenate([row_m1, up, row_p1], axis=1)        # (tile_h, 3*WCinP)
    lhs = lhs.astype(jnp.bfloat16)
    acc = jnp.dot(lhs, t_ref[...], preferred_element_type=jnp.float32)
    acc = acc + b_ref[...]

    o_ref[0] = acc.astype(o_ref.dtype)


def resize_conv2d(x_nchw, weight, bias, *, scale_factor, mode="nearest",
                  channels_last_out=False):
    """Forward pass of ResizeConv2d.

    x_nchw : (N, Cin, H, W)       float32
    weight : (Cout, Cin, 3, 3)    float32  (PyTorch conv weight layout)
    bias   : (Cout,)              float32
    Returns (N, Cout, H*s, W*s)   float32  (or NHWC if channels_last_out)
    """
    if mode != "nearest":
        raise NotImplementedError("only mode='nearest' is implemented")
    N, Cin, H, W = x_nchw.shape
    Cout, Cin_w, KH, KW = weight.shape
    assert Cin == Cin_w
    assert KH == 3 and KW == 3, "module hardcodes padding=1 -> 'same' conv for k=3"
    s = int(scale_factor)
    Hu, Wu = H * s, W * s
    pad_w = KW // 2

    WCin = W * Cin
    WCinP = _round_up(WCin, 128)            # lane-aligned LHS / T K-blocks
    WuCout = Wu * Cout

    # ---- glue (small & cheap): NCHW -> lane-flat (N, H, WCinP) --------------
    xf = jnp.transpose(x_nchw, (0, 2, 3, 1)).reshape(N, H, WCin)
    if WCinP != WCin:
        xf = jnp.pad(xf, ((0, 0), (0, 0), (0, WCinP - WCin)))

    # ---- fold nearest W-upsample + width zero-pad + kw taps + kh fold into a
    #      banded weight  T : (3*WCinP, Wu*Cout), bf16 -----------------------
    xo = jnp.arange(W)                              # original-width column
    x_out = jnp.arange(Wu)                          # output (upsampled) column
    kw_i = jnp.arange(KW)
    xu = x_out[None, :] + kw_i[:, None] - pad_w     # (KW, Wu) upsampled col read
    valid = (xu >= 0) & (xu < Wu)
    src = jnp.clip(xu, 0, Wu - 1) // s              # (KW, Wu) source orig column
    sel = (valid[None] & (src[None] == xo[:, None, None])).astype(jnp.float32)
    w_hwio = jnp.transpose(weight, (2, 3, 1, 0)).astype(jnp.float32)
    t5 = jnp.einsum("wkx,hkio->hwixo", sel, w_hwio)  # (KH, W, Cin, Wu, Cout)
    t3 = t5.reshape(KH, WCin, WuCout)
    t_banded = jnp.zeros((KH, WCinP, WuCout), jnp.float32).at[:, :WCin, :].set(t3)
    t_banded = t_banded.reshape(KH * WCinP, WuCout).astype(jnp.bfloat16)

    b_flat = jnp.tile(bias, Wu).reshape(1, WuCout).astype(jnp.float32)

    tile_h = _pick_tile_h(Hu, s, WCinP, WuCout)
    n_row = Hu // tile_h

    kernel = functools.partial(
        _resize_conv_kernel, H=H, WCinP=WCinP, WuCout=WuCout, s=s, tile_h=tile_h)

    out_flat = pl.pallas_call(
        kernel,
        out_shape=jax.ShapeDtypeStruct((N, Hu, WuCout), x_nchw.dtype),
        grid_spec=pltpu.PrefetchScalarGridSpec(
            num_scalar_prefetch=0,
            grid=(N, n_row),
            in_specs=[
                pl.BlockSpec((1, H, WCinP), lambda n, r: (n, 0, 0)),
                pl.BlockSpec((KH * WCinP, WuCout), lambda n, r: (0, 0)),
                pl.BlockSpec((1, WuCout), lambda n, r: (0, 0)),
            ],
            out_specs=pl.BlockSpec((1, tile_h, WuCout), lambda n, r: (n, r, 0)),
        ),
        compiler_params=pltpu.CompilerParams(
            dimension_semantics=("parallel", "parallel"),
            vmem_limit_bytes=32 * 1024 * 1024),   # safe on v5e/v6e/v7x
    )(xf, t_banded, b_flat)

    out_nhwc = out_flat.reshape(N, Hu, Wu, Cout)
    if channels_last_out:
        return out_nhwc                 # avoids the output-sized transpose
    # NOTE: this NHWC->NCHW transpose is a full extra HBM read+write of the
    # output; return channels-last if the consumer allows it.
    return jnp.transpose(out_nhwc, (0, 3, 1, 2))


if __name__ == "__main__":
    # Module config (synthetic, deterministic init).
    in_channels, out_channels, kernel_size, scale_factor = 4, 8, 3, 2

    key = jax.random.PRNGKey(0)
    kx, kw, kb = jax.random.split(key, 3)

    # Input: NCHW, small shape.
    x = jax.random.normal(kx, (2, in_channels, 16, 16), dtype=jnp.float32)

    # Deterministic parameter init (shapes as in nn.Conv2d(in, out, 3)).
    fan_in = in_channels * kernel_size * kernel_size
    bound = 1.0 / (fan_in ** 0.5)
    weight = jax.random.uniform(
        kw, (out_channels, in_channels, kernel_size, kernel_size),
        minval=-bound, maxval=bound, dtype=jnp.float32)
    bias = jax.random.uniform(
        kb, (out_channels,), minval=-bound, maxval=bound, dtype=jnp.float32)

    out = resize_conv2d(x, weight, bias, scale_factor=scale_factor)
    out = jax.block_until_ready(out)

    # Reference check: nearest upsample + pad=1 conv via XLA (f32).
    x_up = jnp.repeat(jnp.repeat(x, scale_factor, axis=2), scale_factor, axis=3)
    ref = jax.lax.conv_general_dilated(
        x_up, weight, window_strides=(1, 1), padding=((1, 1), (1, 1)),
        dimension_numbers=("NCHW", "OIHW", "NCHW"))
    ref = ref + bias[None, :, None, None]

    assert out.shape == (2, out_channels, 32, 32), out.shape
    # bf16 MXU inputs with f32 accumulation -> tolerance relaxed vs pure f32.
    assert jnp.allclose(out, ref, atol=2e-2, rtol=2e-2), float(
        jnp.max(jnp.abs(out - ref)))

    print("KERNEL_OK")
</pallas_src>

<mosaic_0001>
module attributes {stable_mosaic.version = 11 : i64} {
  func.func @_resize_conv_kernel(%arg0: i32, %arg1: i32, %arg2: memref<1x16x128xf32, #tpu.memory_space<vmem>>, %arg3: memref<384x256xbf16, #tpu.memory_space<vmem>>, %arg4: memref<1x256xf32, #tpu.memory_space<vmem>>, %arg5: memref<1x32x256xf32, #tpu.memory_space<vmem>>) attributes {dimension_semantics = [#tpu.dimension_semantics<parallel>, #tpu.dimension_semantics<parallel>], iteration_bounds = array<i64: 2, 1>, scalar_prefetch = 0 : i64, scratch_operands = 0 : i64, tpu.core_type = #tpu.core_type<tc>, window_params = [{transform_indices = @transform_0, window_bounds = array<i64: 1, 16, 128>}, {pipeline_mode = #tpu.pipeline_mode<synchronous>, transform_indices = @transform_1, window_bounds = array<i64: 384, 256>}, {pipeline_mode = #tpu.pipeline_mode<synchronous>, transform_indices = @transform_2, window_bounds = array<i64: 1, 256>}, {transform_indices = @transform_3, window_bounds = array<i64: 1, 32, 256>}]} {
    %c16_i32 = arith.constant 16 : i32
    %0 = arith.muli %arg1, %c16_i32 : i32
    %1 = tpu.assume_multiple %0, 8 : i32
    %c0 = arith.constant 0 : index
    %2 = arith.index_cast %1 : i32 to index
    %c0_0 = arith.constant 0 : index
    %3 = vector.load %arg2[%c0, %2, %c0_0] : memref<1x16x128xf32, #tpu.memory_space<vmem>>, vector<1x16x128xf32>
    %4 = vector.shape_cast %3 : vector<1x16x128xf32> to vector<16x128xf32>
    %5 = vector.shape_cast %4 : vector<16x128xf32> to vector<16x1x128xf32>
    %6 = vector.shape_cast %5 : vector<16x1x128xf32> to vector<16x1x128xf32>
    %7 = vector.broadcast %6 : vector<16x1x128xf32> to vector<16x2x128xf32>
    %8 = vector.shape_cast %7 : vector<16x2x128xf32> to vector<32x128xf32>
    %c0_i32 = arith.constant 0 : i32
    %9 = arith.cmpi sgt, %arg1, %c0_i32 : i32
    %c16_i32_1 = arith.constant 16 : i32
    %10 = arith.muli %arg1, %c16_i32_1 : i32
    %c1_i32 = arith.constant 1 : i32
    %11 = arith.subi %10, %c1_i32 : i32
    %c0_i32_2 = arith.constant 0 : i32
    %12 = arith.maxsi %11, %c0_i32_2 : i32
    %c0_3 = arith.constant 0 : index
    %13 = arith.index_cast %12 : i32 to index
    %c0_4 = arith.constant 0 : index
    %14 = vector.load %arg2[%c0_3, %13, %c0_4] : memref<1x16x128xf32, #tpu.memory_space<vmem>>, vector<1x1x128xf32>
    %15 = vector.shape_cast %14 : vector<1x1x128xf32> to vector<1x128xf32>
    %cst = arith.constant 0.000000e+00 : f32
    %16 = vector.broadcast %cst : f32 to vector<1x128xf32>
    %17 = arith.select %9, %15, %16 : vector<1x128xf32>
    %c0_i32_5 = arith.constant 0 : i32
    %18 = arith.cmpi slt, %arg1, %c0_i32_5 : i32
    %c1_i32_6 = arith.constant 1 : i32
    %19 = arith.addi %arg1, %c1_i32_6 : i32
    %c16_i32_7 = arith.constant 16 : i32
    %20 = arith.muli %19, %c16_i32_7 : i32
    %c15_i32 = arith.constant 15 : i32
    %21 = arith.minsi %20, %c15_i32 : i32
    %c0_8 = arith.constant 0 : index
    %22 = arith.index_cast %21 : i32 to index
    %c0_9 = arith.constant 0 : index
    %23 = vector.load %arg2[%c0_8, %22, %c0_9] : memref<1x16x128xf32, #tpu.memory_space<vmem>>, vector<1x1x128xf32>
    %24 = vector.shape_cast %23 : vector<1x1x128xf32> to vector<1x128xf32>
    %cst_10 = arith.constant 0.000000e+00 : f32
    %25 = vector.broadcast %cst_10 : f32 to vector<1x128xf32>
    %26 = arith.select %18, %24, %25 : vector<1x128xf32>
    %27 = vector.extract_strided_slice %8 {offsets = [0, 0], sizes = [31, 128], strides = [1, 1]} : vector<32x128xf32> to vector<31x128xf32>
    %28 = tpu.concatenate %17, %27 in 0 : vector<1x128xf32>, vector<31x128xf32> -> vector<32x128xf32>
    %29 = vector.extract_strided_slice %8 {offsets = [1, 0], sizes = [31, 128], strides = [1, 1]} : vector<32x128xf32> to vector<31x128xf32>
    %30 = tpu.concatenate %29, %26 in 0 : vector<31x128xf32>, vector<1x128xf32> -> vector<32x128xf32>
    %31 = tpu.concatenate %28, %8, %30 in 1 : vector<32x128xf32>, vector<32x128xf32>, vector<32x128xf32> -> vector<32x384xf32>
    %32 = arith.truncf %31 : vector<32x384xf32> to vector<32x384xbf16>
    %c0_11 = arith.constant 0 : index
    %c0_12 = arith.constant 0 : index
    %33 = vector.load %arg3[%c0_11, %c0_12] : memref<384x256xbf16, #tpu.memory_space<vmem>>, vector<384x256xbf16>
    %cst_13 = arith.constant dense<0.000000e+00> : vector<32x256xf32>
    %34 = tpu.matmul %32, %33, %cst_13 {dimension_numbers = #tpu.dot_dimension_numbers<[1], [0], [0], [1], [0, 0, 1, 1], [], []>} : vector<32x384xbf16>, vector<384x256xbf16>, vector<32x256xf32> -> vector<32x256xf32>
    %c0_14 = arith.constant 0 : index
    %c0_15 = arith.constant 0 : index
    %35 = vector.load %arg4[%c0_14, %c0_15] : memref<1x256xf32, #tpu.memory_space<vmem>>, vector<1x256xf32>
    %36 = vector.broadcast %35 : vector<1x256xf32> to vector<32x256xf32>
    %37 = arith.addf %34, %36 : vector<32x256xf32>
    %c0_16 = arith.constant 0 : index
    %c0_17 = arith.constant 0 : index
    %c0_18 = arith.constant 0 : index
    %38 = vector.load %arg5[%c0_16, %c0_17, %c0_18] : memref<1x32x256xf32, #tpu.memory_space<vmem>>, vector<1x32x256xf32>
    %39 = vector.shape_cast %38 : vector<1x32x256xf32> to vector<32x256xf32>
    %40 = vector.shape_cast %37 : vector<32x256xf32> to vector<1x32x256xf32>
    tpu.vector_store %arg5[%c0_16, %c0_17, %c0_18], %40 {strides = array<i32>} : memref<1x32x256xf32, #tpu.memory_space<vmem>>, vector<1x32x256xf32>,
    return
  }
  func.func @transform_0(%arg0: i32, %arg1: i32) -> (i32, i32, i32) {
    %c0_i32 = arith.constant 0 : i32
    %c0_i32_0 = arith.constant 0 : i32
    %c0_i32_1 = arith.constant 0 : i32
    return %arg0, %c0_i32, %c0_i32_0 : i32, i32, i32
  }
  func.func @transform_1(%arg0: i32, %arg1: i32) -> (i32, i32) {
    %c0_i32 = arith.constant 0 : i32
    %c0_i32_0 = arith.constant 0 : i32
    %c0_i32_1 = arith.constant 0 : i32
    return %c0_i32, %c0_i32_0 : i32, i32
  }
  func.func @transform_2(%arg0: i32, %arg1: i32) -> (i32, i32) {
    %c0_i32 = arith.constant 0 : i32
    %c0_i32_0 = arith.constant 0 : i32
    %c0_i32_1 = arith.constant 0 : i32
    return %c0_i32, %c0_i32_0 : i32, i32
  }
  func.func @transform_3(%arg0: i32, %arg1: i32) -> (i32, i32, i32) {
    %c0_i32 = arith.constant 0 : i32
    %c0_i32_0 = arith.constant 0 : i32
    return %arg0, %arg1, %c0_i32 : i32, i32, i32
  }
}

</mosaic_0001>

<bundles_post_ra>
// kernel: tpu_custom_call.1
= control target key start
LH: loop header
LB: loop body
LE: loop exit
PB: predicated region body
PF: predicated region fallthrough
CT: control target
= control target key end

     0   :  { %8 = vsyncpa [#allocation3], 0  ;;  %s1759_s0 = inlined_call_operand.hbm [shape: f32[2,16,128], index: 0, kind: input, shape index: {}]   ;;  %s1760_s1 = inlined_call_operand.hbm [shape: bf16[384,256], index: 1, kind: input, shape index: {}]   ;;  %s1761_s2 = inlined_call_operand.vmem [shape: f32[1,256], index: 2, kind: input, shape index: {}]   ;;  %s1762_s3 = inlined_call_operand.hbm [shape: f32[2,32,256], index: 3, kind: output, shape index: {}]  }
   0x1   :  { %10 = vsyncpa [#allocation3 + $0x1], 0 }
   0x2   :  { %11 = vsyncpa [#allocation6], 0 }
   0x3   :  { %12 = vsyncpa [#allocation4], 0 }
   0x4   :  { %14 = vsyncpa [#allocation4 + $0x1], 0  ;;  %s1467_s12 = smov 0   ;;  %s1469_s13 = smov 0  }
   0x5   :  { %s1471_s14 = smov 0   ;;  %s1473_s15 = smov 0  }
   0x6   :  { %s1475_s16 = smov 0   ;;  %s1477_s17 = smov 0  }
   0x7 LB: > { %s1045_s18 = sadd.s32 4294967295, %s1433_s17   ;;  %s1046_s19 = sadd.s32 4294967294, %s1433_s17   ;;  %s1433_s17 = sphi %s1477_s17, %s20_s17   ;;  %s1429_s16 = sphi %s1475_s16, %s1786_s16   ;;  %s1425_s15 = sphi %s1473_s15, %s1785_s15   ;;  %s1421_s14 = sphi %s1471_s14, %s1784_s14   ;;  %s1417_s13 = sphi %s1469_s13, %s1783_s13   ;;  %s1413_s12 = sphi %s1467_s12, %s1782_s12  }
   0x8   : > { %p52_p0 = scmp.ne.s32.totalorder %s1417_s13, %s1413_s12  ;;  %p1501_p1 = scmp.eq.s32.totalorder %s1045_s18, 0 }
   0x9   : > { %p1505_p2 = scmp.eq.s32.totalorder %s1045_s18, 1  ;;  %p126_p3 = scmp.eq.s32.totalorder %s1046_s19, 1 }
   0xa   : > { %s1767_s20 = scalar_select %p1501_p1, 1, 0 }
   0xb   : > { %s1768_s21 = scalar_select %p1505_p2, 1, 0 }
   0xc   : > { %p1511_p4 = por %p1501_p1, %p52_p0  ;;  %p1047_p5 = scmp.ge.s32.totalorder %s1433_s17, 1 }
   0xd   : > { %p1516_p6 = por %p126_p3, %p52_p0  ;;  %p133_p7 = scmp.lt.s32.totalorder %s1433_s17, 3 }
   0xe   : > { %s1769_s22 = scalar_select %p1511_p4, 1, 0 }
   0xf   : > { %s1770_s23 = scalar_select %p1516_p6, 1, 0 }
  0x10   : > { %p1521_p8 = pnand %p1047_p5, %p133_p7  ;;  %s1435_s25 = smov [#allocation5]  }
  0x11   : > { %s145_s26 = sshll.u32 %s1435_s25, 4  ;;  %s32_s28 = sadd.s32 1, %s1429_s16  ;;  %s146_s26 = int_to_ptr.vmem [resolvable:$true] %s145_s26 }
  0x12   : > { %s1771_s24 = scalar_select %p1521_p8, 1, 0 }
  0x13   : > { %p1141_p9 = pneg %p1521_p8  ;;  %s1289_s4 = scalar_lea.hbm %s1760_s1, 6144 }
  0x14   : > { %p1290_p12 = scmp.ne.s32.totalorder %s1760_s1, %s1289_s4  ;;  %p1296_p5 = scmp.lt.u32.totalorder %s1289_s4, %s1760_s1 }
  0x15   : > { %p1530_p11 = pnand %p1141_p9, %p1501_p1 }
  0x17   : > { %p1291_p13 = pneg %p1530_p11 }
  0x19   : > { %p1292_p0 = pnand %p1291_p13, %p1290_p12 }
  0x1b   : > { %p1293_p3 = pneg %p1292_p0 }
  0x1d   : > { %p1298_p7 = pnand %p1296_p5, %p1293_p3 }
  0x1f   : > { %1301 = shalt.err (!%p1298_p7)
}
  0x20   : > { %s1302_s9 = scalar_lea.vmem %s146_s26, 6144  ;;  %p1310_p1 = scmp.lt.s32.totalorder %s146_s26, %s146_s26 }
  0x21   : > { %p1303_p9 = scmp.ne.s32.totalorder %s146_s26, %s1302_s9  ;;  %p1311_p4 = scmp.lt.s32.totalorder %s1302_s9, %s1302_s9 }
  0x23   : > { %p1305_p10 = pnand %p1303_p9, %p1291_p13  ;;  %p1312_p8 = por %p1311_p4, %p1310_p1 }
  0x25   : > { %p1306_p6 = pneg %p1305_p10 }
  0x27   : > { %p1313_p2 = pnand %p1312_p8, %p1306_p6 }
  0x29   : > { %1316 = shalt.err (!%p1313_p2)
}
  0x2a   : > { %s1436_s10 = smov 128   ;;  %s1437_s11 = smov 8  }
  0x2b   : > { %1144 = dma.hbm_to_vmem [thread:$0]  (!%p1530_p11), %s1760_s1, 6144, %s146_s26, [#allocation6], %s1436_s10, %s1436_s10, %s1437_s11  }
  0x2c   : > { %p34_p1 = scmp.ge.s32.totalorder %s32_s28, 2  ;;  %s39_s25 = sadd.s32 1, %s1421_s14 }
  0x2d   : > { %p46_p2 = scmp.ne.s32.totalorder %s1421_s14, %s1417_s13  ;;  %p47_p4 = scmp.eq.s32.totalorder %s1433_s17, 0 }
  0x2e   : > { %s1788_s28 = smov (%p34_p1, %s32_s28), 0  ;;  %p1774_p8 = scmp.ne.s32.totalorder %s1768_s21, 0 }
  0x2f   : > { %p1560_p6 = por %p47_p4, %p46_p2  ;;  %s36_s30 = ssub.s32 %s1429_s16, %s1788_s28 }
  0x30   : > { %p1566_p10 = por %p1774_p8, %p46_p2  ;;  %p1154_p12 = scmp.lt.s32.totalorder %s1433_s17, 2 }
  0x31   : > { %p37_p11 = scmp.eq.s32.totalorder %s36_s30, 0  ;;  %s162_s26 = sand.u32 1, %s1421_s14  }
  0x32   : > { %s1050_s4 = sshll.u32 %s162_s26, 4  ;;  %s1115_s6 = sshll.u32 %s1429_s16, 8 }
  0x33   : > { %s1575_s5 = scalar_select %p37_p11, %s1421_s14, %s39_s25  }
  0x34   : > { %s1581_s9 = scalar_lea.hbm %s1759_s0, %s1115_s6  ;;  %s166_s21 = scalar_lea.vmem [#allocation2], %s1050_s4 }
  0x35   : > { %s173_s18 = sshll.u32 %s166_s21, 4  ;;  %p1587_p13 = pnand %p1154_p12, %p1560_p6  ;;  %s1583_s18 = int_to_ptr.vmem [resolvable:$true] %s173_s18 }
  0x36   : > { %s1591_s25 = scalar_lea.sflag [#allocation3], %s162_s26  ;;  %s1317_s30 = scalar_lea.hbm %s1581_s9, 256 }
  0x37   : > { %p1318_p0 = scmp.ne.s32.totalorder %s1581_s9, %s1317_s30  ;;  %p1319_p3 = pneg %p1587_p13 }
  0x38   : > { %s1322_s29 = scalar_lea.hbm %s1759_s0, 512  ;;  %p1323_p9 = scmp.lt.u32.totalorder %s1581_s9, %s1759_s0 }
  0x39   : > { %p1320_p5 = pnand %p1319_p3, %p1318_p0  ;;  %p1324_p1 = scmp.lt.u32.totalorder %s1322_s29, %s1317_s30 }
  0x3a   : > { %p1326_p4 = scmp.lt.u32.totalorder %s1317_s30, %s1581_s9 }
  0x3b   : > { %p1321_p7 = pneg %p1320_p5  ;;  %p1325_p2 = por %p1324_p1, %p1323_p9 }
  0x3d   : > { %p1327_p6 = por %p1326_p4, %p1325_p2 }
  0x3f   : > { %p1328_p8 = pnand %p1327_p6, %p1321_p7 }
  0x41   : > { %1331 = shalt.err (!%p1328_p8)
}
  0x42   : > { %s1332_s26 = scalar_lea.vmem %s1583_s18, 256  ;;  %s1438_s21 = smov [#allocation2]  }
  0x43   : > { %p1333_p12 = scmp.ne.s32.totalorder %s1583_s18, %s1332_s26  ;;  %s1337_s4 = sshll.u32 %s1438_s21, 4  ;;  %s1338_s4 = int_to_ptr.vmem [resolvable:$false] %s1337_s4 }
  0x44   : > { %s1339_s6 = scalar_lea.vmem %s1338_s4, 512  ;;  %p1340_p5 = scmp.lt.s32.totalorder %s1583_s18, %s1338_s4 }
  0x45   : > { %p1335_p11 = pnand %p1333_p12, %p1319_p3  ;;  %p1341_p9 = scmp.lt.s32.totalorder %s1339_s6, %s1332_s26 }
  0x47   : > { %p1336_p0 = pneg %p1335_p11  ;;  %p1342_p1 = por %p1341_p9, %p1340_p5 }
  0x49   : > { %p1343_p2 = pnand %p1342_p1, %p1336_p0 }
  0x4b   : > { %1346 = shalt.err (!%p1343_p2)
}
  0x4c   : > { %1148 = dma.hbm_to_vmem [thread:$0]  (!%p1587_p13), %s1581_s9, 256, %s1583_s18, %s1591_s25, %s1436_s10, %s1436_s10, %s1437_s11  }
  0x4d   : > { %p1777_p3 = scmp.ne.s32.totalorder %s1771_s24, 0 }
  0x4e   : > { %s1625_s30 = sand.u32 (!%p1777_p3), 1, %s1417_s13   ;;  %p1778_p7 = scmp.ne.s32.totalorder (!%p1777_p3), %s1769_s22, 0 }
  0x4f   : > { %185 = sbr.rel (%p1777_p3) target bundleno = 397 (0x18d), region = 32  ;;  %s1054_s29 = sshll.u32 (!%p1777_p3), %s1625_s30, 4 }
  0x50   : > { %s188_s7 = scalar_lea.sflag (!%p1777_p3), [#allocation3], %s1625_s30  ;;  %s1629_s8 = scalar_lea.vmem (!%p1777_p3), [#allocation2], %s1054_s29 }
  0x56   : > { %1400 = dma.done.wait (%p1778_p7), %s188_s7, 256  }
  0x57   : > { %1402 = vsyncadd (%p1778_p7), %s188_s7, 4294967040  ;;  %p1779_p13 = scmp.ne.s32.totalorder %s1767_s20, 0 }
  0x59   : > { %1404 = dma.done.wait (%p1779_p13), [#allocation6], 6144  }
  0x5a   : > { %1406 = vsyncadd (%p1779_p13), [#allocation6], 4294961152  ;;  %v1439_v0 = vmov 0   ;;  %v1215_v1 = vld [vmem:[#allocation5 + $0x4] ss:$8 sps:$4 sm:$0xff]   ;;  %v230_v23 = vlaneseq  ;;  %vm490_vm0 = vcmask 1046528  }
  0x5b   : > { %901 = vmatprep.mubr.bf16.mxu0 %v1439_v0  ;;  %v1217_v2 = vld [vmem:[#allocation5] ss:$8 sps:$4 sm:$0xff]   ;;  %816 = vmatprep.subr.bf16.mxu1 %v1215_v1  ;;  %v1218_v3 = vld [vmem:[#allocation5 + $0x14] ss:$8 sps:$4 sm:$0xff]   ;;  %v1220_v4 = vld [vmem:[#allocation5 + $0x10] ss:$8 sps:$4 sm:$0xff]  }
  0x5c   : > { %817 = vmatpush1.bf16.msra.mxu1 %v1217_v2  ;;  %v1221_v5 = vld [vmem:[#allocation5 + $0x24] ss:$8 sps:$4 sm:$0xff]   ;;  %v1223_v6 = vld [vmem:[#allocation5 + $0x20] ss:$8 sps:$4 sm:$0xff]   ;;  %v1224_v7 = vld [vmem:[#allocation5 + $0x34] ss:$8 sps:$4 sm:$0xff]  }
  0x5d   : > { %818 = vmatprep.subr.bf16.mxu1 %v1218_v3  ;;  %v1226_v8 = vld [vmem:[#allocation5 + $0x30] ss:$8 sps:$4 sm:$0xff]   ;;  %v1239_v9 = vld [vmem:[#allocation5 + $0x104] ss:$8 sps:$4 sm:$0xff]   ;;  %v1243_v11 = vld [vmem:[#allocation5 + $0x100] ss:$8 sps:$4 sm:$0xff]  }
  0x5e   : > { %v1227_v10 = vld [vmem:[#allocation5 + $0x44] ss:$8 sps:$4 sm:$0xff]   ;;  %869 = vmatprep.subr.bf16.mxu0 %v1239_v9  ;;  %v1245_v12 = vld [vmem:[#allocation5 + $0x114] ss:$8 sps:$4 sm:$0xff]   ;;  %v1229_v13 = vld [vmem:[#allocation5 + $0x40] ss:$8 sps:$4 sm:$0xff]  }
  0x5f   : > { %870 = vmatpush1.bf16.msra.mxu0 %v1243_v11  ;;  %v1230_v14 = vld [vmem:[#allocation5 + $0x54] ss:$8 sps:$4 sm:$0xff]   ;;  %v1249_v15 = vld [vmem:[#allocation5 + $0x110] ss:$8 sps:$4 sm:$0xff]   ;;  %v1251_v16 = vld [vmem:[#allocation5 + $0x124] ss:$8 sps:$4 sm:$0xff]  }
  0x60   : > { %819 = vmatpush1.bf16.msra.mxu1 %v1220_v4  ;;  %871 = vmatprep.subr.bf16.mxu0 %v1245_v12  ;;  %v1232_v17 = vld [vmem:[#allocation5 + $0x50] ss:$8 sps:$4 sm:$0xff]   ;;  %v1255_v18 = vld [vmem:[#allocation5 + $0x120] ss:$8 sps:$4 sm:$0xff]   ;;  %v1257_v19 = vld [vmem:[#allocation5 + $0x134] ss:$8 sps:$4 sm:$0xff]  }
  0x61   : > { %820 = vmatprep.subr.bf16.mxu1 %v1221_v5  ;;  %v1233_v20 = vld [vmem:[#allocation5 + $0x64] ss:$8 sps:$4 sm:$0xff]   ;;  %v1440_v21 = vmov 1966171168   ;;  %v1261_v24 = vld [vmem:[#allocation5 + $0x130] ss:$8 sps:$4 sm:$0xff]  }
  0x62   : > { %v228_v22 = vunpack.c.l.s4 %v1440_v21  ;;  %v1235_v25 = vld [vmem:[#allocation5 + $0x60] ss:$8 sps:$4 sm:$0xff]   ;;  %v1263_v26 = vld [vmem:[#allocation5 + $0x144] ss:$8 sps:$4 sm:$0xff]   ;;  %v1236_v27 = vld [vmem:[#allocation5 + $0x74] ss:$8 sps:$4 sm:$0xff]  }
  0x63   : > { %872 = vmatpush1.bf16.msra.mxu0 %v1249_v15  ;;  %v1640_v29 = vshrl.u32 %v230_v23, 7  ;;  %v1238_v30 = vld [vmem:[#allocation5 + $0x70] ss:$8 sps:$4 sm:$0xff]   ;;  %v1267_v31 = vld [vmem:[#allocation5 + $0x140] ss:$8 sps:$4 sm:$0xff]   ;;  %vm477_vm1 = vcmask 1040384  }
  0x64   : > { %821 = vmatpush1.bf16.msra.mxu1 %v1223_v6  ;;  %873 = vmatprep.subr.bf16.mxu0 %v1251_v16  ;;  %v229_v28 = vunpack.c.0.s8 %v228_v22  ;;  %v1269_v32 = vld [vmem:[#allocation5 + $0x154] ss:$8 sps:$4 sm:$0xff]   ;;  %v1241_v33 = vld [vmem:[#allocation5 + $0x84] ss:$8 sps:$4 sm:$0xff]   ;;  %v1441_v34 = vmov 1983009808   ;;  %vm1106_vm2 = vmneg %vm477_vm1 }
  0x65   : > { %822 = vmatprep.subr.bf16.mxu1 %v1224_v7  ;;  %v412_v35 = vunpack.c.l.s4 %v1441_v34  ;;  %v1273_v37 = vld [vmem:[#allocation5 + $0x150] ss:$8 sps:$4 sm:$0xff]   ;;  %v1244_v38 = vld [vmem:[#allocation5 + $0x80] ss:$8 sps:$4 sm:$0xff]   ;;  %v1275_v39 = vld [vmem:[#allocation5 + $0x164] ss:$8 sps:$4 sm:$0xff]  }
  0x66   : > { %v1643_v36 = vsub.s32 %v229_v28, %v1640_v29  ;;  %v1247_v40 = vld [vmem:[#allocation5 + $0x94] ss:$8 sps:$4 sm:$0xff]   ;;  %v1279_v48 = vld [vmem:[#allocation5 + $0x160] ss:$8 sps:$4 sm:$0xff]   ;;  %v1650_v49 = vsub.s32 0, %v1640_v29  ;;  %vm1443_vm3 = vmmov 1  }
  0x67   : > { %874 = vmatpush1.bf16.msra.mxu0 %v1255_v18  ;;  %v222_v41 = vld [vmem:[%s1629_s8] sm:$0xff]  ;;  %v413_v42 = vunpack.c.0.s8 %v412_v35  ;;  %v223_v43 = vld [vmem:[%s1629_s8 + $0x8] sm:$0xff]  ;;  %vm1107_vm4 = vmpackc.low %vm1443_vm3, %vm1106_vm2  ;;  %s1056_s24 = sshll.u32 %s1625_s30, 6  ;;  %s1116_s9 = sshll.u32 %s1425_s15, 10 }
  0x68   : > { %823 = vmatpush1.bf16.msra.mxu1 %v1226_v8  ;;  %875 = vmatprep.subr.bf16.mxu0 %v1257_v19  ;;  %v226_v44 = vcombine.high %v222_v41, %v222_v41  ;;  %v233_v45 = vrot.slane %v222_v41, %v1643_v36  ;;  %v282_v46 = vrot.slane %v223_v43, %v1643_v36  ;;  %v1250_v50 = vld [vmem:[#allocation5 + $0x90] ss:$8 sps:$4 sm:$0xff]   ;;  %v1281_v51 = vld [vmem:[#allocation5 + $0x174] ss:$8 sps:$4 sm:$0xff]   ;;  %v1253_v55 = vld [vmem:[#allocation5 + $0xa4] ss:$8 sps:$4 sm:$0xff]   ;;  %s1710_s25 = scalar_lea.hbm %s1762_s3, %s1116_s9 }
  0x69   : > { %824 = vmatprep.subr.bf16.mxu1 %v1227_v10  ;;  %v275_v47 = vcombine.high %v223_v43, %v223_v43  ;;  %v1655_v56 = vsub.s32 %v413_v42, %v1640_v29  ;;  %v1285_v1 = vld [vmem:[#allocation5 + $0x170] ss:$8 sps:$4 sm:$0xff]   ;;  %v1256_v6 = vld [vmem:[#allocation5 + $0xa0] ss:$8 sps:$4 sm:$0xff]   ;;  %v1259_v10 = vld [vmem:[#allocation5 + $0xb4] ss:$8 sps:$4 sm:$0xff]  }
  0x6a   : > { %v240_v52 = vrot.slane %v226_v44, %v1643_v36  ;;  %v241_v53 = vcombine.high %v233_v45, %v233_v45  ;;  %v249_v54 = vrot.slane %v233_v45, %v1643_v36  ;;  %v290_v57 = vcombine.high %v282_v46, %v282_v46  ;;  %v1262_v23 = vld [vmem:[#allocation5 + $0xb0] ss:$8 sps:$4 sm:$0xff]   ;;  %v1265_v28 = vld [vmem:[#allocation5 + $0xc4] ss:$8 sps:$4 sm:$0xff]   ;;  %v1268_v43 = vld [vmem:[#allocation5 + $0xc0] ss:$8 sps:$4 sm:$0xff]  }
  0x6b   : > { %876 = vmatpush1.bf16.msra.mxu0 %v1261_v24  ;;  %v298_v58 = vrot.slane %v282_v46, %v1643_v36  ;;  %v289_v59 = vrot.slane %v275_v47, %v1643_v36  ;;  %s217_s10 = scalar_lea.vmem [#allocation7], %s1056_s24  ;;  %s931_s15 = scalar_lea.sflag [#allocation4], %s1625_s30 }
  0x6c   : > { %825 = vmatpush1.bf16.msra.mxu1 %v1229_v13  ;;  %877 = vmatprep.subr.bf16.mxu0 %v1263_v26  ;;  %v242_v60 = vcombine.high %v240_v52, %v240_v52  ;;  %v256_v61 = vrot.slane %v240_v52, %v1643_v36  ;;  %v263_v62 = vrot.slane %v241_v53, %v1643_v36  ;;  %s947_s11 = sshll.u32 %s217_s10, 4  ;;  %s1444_s21 = smov [#allocation7]   ;;  %s1705_s11 = int_to_ptr.vmem [resolvable:$true] %s947_s11 }
  0x6d   : > { %826 = vmatprep.subr.bf16.mxu1 %v1230_v14  ;;  %v271_v63 = vcombine.high %v249_v54, %v249_v54  ;;  %v327_v2 = vrot.slane %v249_v54, %v1650_v49  ;;  %v312_v3 = vrot.slane %v290_v57, %v1643_v36  ;;  %v320_v4 = vcombine.high %v298_v58, %v298_v58  ;;  %v1274_v57 = vld [vmem:[#allocation5 + $0xd0] ss:$8 sps:$4 sm:$0xff]   ;;  %s1347_s26 = scalar_lea.vmem %s1705_s11, 1024  ;;  %s1351_s4 = sshll.u32 %s1444_s21, 4  ;;  %s1352_s4 = int_to_ptr.vmem [resolvable:$false] %s1351_s4 }
  0x6e   : > { %v359_v5 = vrot.slane %v298_v58, %v1650_v49  ;;  %v270_v7 = vrot.slane %v242_v60, %v1643_v36  ;;  %v272_v8 = vcombine.high %v256_v61, %v256_v61  ;;  %v273_v9 = vcombine.high %v263_v62, %v263_v62  ;;  %p1348_p4 = scmp.ne.s32.totalorder %s1705_s11, %s1347_s26  ;;  %s1353_s6 = scalar_lea.vmem %s1352_s4, 2048 }
  0x6f   : > { %878 = vmatpush1.bf16.msra.mxu0 %v1267_v31  ;;  %v331_v11 = vrot.slane %v263_v62, %v1650_v49  ;;  %v335_v12 = vrot.slane %v271_v63, %v1650_v49  ;;  %v343_v13 = vrot.slane %v256_v61, %v1650_v49  ;;  %v322_v14 = vcombine.high %v312_v3, %v312_v3  ;;  %v1277_v61 = vld [vmem:[#allocation5 + $0xe4] ss:$8 sps:$4 sm:$0xff]   ;;  %p1354_p12 = scmp.lt.s32.totalorder %s1705_s11, %s1352_s4  ;;  %p1355_p11 = scmp.lt.s32.totalorder %s1353_s6, %s1347_s26 }
  0x70   : > { %827 = vmatpush1.bf16.msra.mxu1 %v1232_v17  ;;  %879 = vmatprep.subr.bf16.mxu0 %v1269_v32  ;;  %v274_v15 = vcombine.high %v270_v7, %v270_v7  ;;  %v339_v16 = vrot.slane %v273_v9, %v1650_v49  ;;  %v347_v17 = vrot.slane %v270_v7, %v1650_v49  ;;  %p1349_p6 = pnand %p1348_p4, %p1566_p10 }
  0x71   : > { %828 = vmatprep.subr.bf16.mxu1 %v1233_v20  ;;  %v351_v18 = vrot.slane %v272_v8, %v1650_v49  ;;  %v409_v19 = vcombine.low %v327_v2, %v331_v11  ;;  %v363_v20 = vrot.slane %v312_v3, %v1650_v49  ;;  %v367_v21 = vrot.slane %v320_v4, %v1650_v49  ;;  %v1280_v4 = vld [vmem:[#allocation5 + $0xe0] ss:$8 sps:$4 sm:$0xff]   ;;  %p1356_p0 = por %p1355_p11, %p1354_p12 }
  0x72   : > { %v371_v22 = vrot.slane %v322_v14, %v1650_v49  ;;  %v355_v24 = vrot.slane %v274_v15, %v1650_v49  ;;  %v426_v26 = vcombine.low %v343_v13, %v347_v17  ;;  %v1442_v8 = vmov 0.0   ;;  %p1350_p8 = pneg %p1349_p6 }
  0x73   : > { %880 = vmatpush1.bf16.msra.mxu0 %v1273_v37  ;;  %v443_v31 = vcombine.low %v359_v5, %v363_v20  ;;  %v503_v9 = vrot.slane %v1442_v8, 1 }
  0x74   : > { %829 = vmatpush1.bf16.msra.mxu1 %v1235_v25  ;;  %881 = vmatprep.subr.bf16.mxu0 %v1275_v39  ;;  %v410_v25 = vcombine.low %v335_v12, %v339_v16  ;;  %v444_v32 = vcombine.low %v367_v21, %v371_v22  ;;  %v427_v35 = vcombine.low %v351_v18, %v355_v24  ;;  %v1286_v12 = vld [vmem:[#allocation5 + $0xf0] ss:$8 sps:$4 sm:$0xff]   ;;  %p1357_p5 = pnand %p1356_p0, %p1350_p8 }
  0x75   : > { %830 = vmatprep.subr.bf16.mxu1 %v1236_v27  ;;  %v291_v27 = vcombine.high %v289_v59, %v289_v59  ;;  %v434_v37 = vrot.slane %v426_v26, %v1655_v56  ;;  %v451_v39 = vrot.slane %v443_v31, %v1655_v56  ;;  %v564_v26 = vld [vmem:[%s1761_s2] sm:$0x3] }
  0x76   : > { %v424_v34 = vrot.slane %v410_v25, %v1655_v56  ;;  %v441_v45 = vrot.slane %v427_v35, %v1655_v56 }
  0x77   : > { %882 = vmatpush1.bf16.msra.mxu0 %v1279_v48  ;;  %v1271_v48 = vld [vmem:[#allocation5 + $0xd4] ss:$8 sps:$4 sm:$0xff]  }
  0x78   : > { %831 = vmatpush1.bf16.msra.mxu1 %v1238_v30  ;;  %883 = vmatprep.subr.bf16.mxu0 %v1281_v51  ;;  %v417_v30 = vrot.slane %v409_v19, %v1655_v56  ;;  %v442_v51 = vcombine.low %v434_v37, %v441_v45 }
  0x79   : > { %832 = vmatprep.subr.bf16.mxu1 %v1241_v33  ;;  %v305_v33 = vrot.slane %v289_v59, %v1643_v36 }
  0x7a   : > { %v425_v44 = vcombine.low %v417_v30, %v424_v34  ;;  %v492_v58 = vrot.slane %v442_v51, 1 }
  0x7b   : > { %884 = vmatpush1.bf16.msra.mxu0 %v1285_v1  ;;  %v321_v41 = vcombine.high %v305_v33, %v305_v33  ;;  %v375_v42 = vrot.slane %v305_v33, %v1650_v49 }
  0x7c   : > { %833 = vmatpush1.bf16.msra.mxu1 %v1244_v38  ;;  %v319_v38 = vrot.slane %v291_v27, %v1643_v36  ;;  %v491_v52 = vrot.slane %v425_v44, 1  ;;  %v511_v59 = vpack.c.bf16 %v442_v51, %v425_v44  ;;  %v478_v5 = vrot.slane %v425_v44, 7 }
  0x7d   : > { %834 = vmatprep.subr.bf16.mxu1 %v1247_v40  ;;  %v458_v40 = vrot.slane %v444_v32, %v1655_v56  ;;  %v383_v36 = vrot.slane %v321_v41, %v1650_v49  ;;  %v572_v27 = vsub.s32 1, %v1640_v29 }
  0x7e   : > { %v323_v46 = vcombine.high %v319_v38, %v319_v38  ;;  %v379_v47 = vrot.slane %v319_v38, %v1650_v49  ;;  %848 = vmatprep.mubr.bf16.mxu1 %v511_v59  ;;  %v493_v63 = vsel %vm490_vm0, %v491_v52, %v492_v58 }
  0x7f   : > { %v573_v30 = vrot.slane %v564_v26, %v572_v27 }
  0x80   : > { %835 = vmatpush1.bf16.msra.mxu1 %v1250_v50  ;;  %v459_v50 = vcombine.low %v451_v39, %v458_v40  ;;  %v387_v53 = vrot.slane %v323_v46, %v1650_v49 }
  0x81   : > { %836 = vmatprep.subr.bf16.mxu1 %v1253_v55  ;;  %v460_v55 = vcombine.low %v375_v42, %v379_v47 }
  0x82   : > { %v494_v54 = vrot.slane %v459_v50, 1  ;;  %v461_v60 = vcombine.low %v383_v36, %v387_v53  ;;  %v481_v18 = vrot.slane %v459_v50, 7 }
  0x83   : > { %v468_v62 = vrot.slane %v460_v55, %v1655_v56 }
  0x84   : > { %837 = vmatpush1.bf16.msra.mxu1 %v1256_v6  ;;  %v495_v1 = vsel %vm490_vm0, %v492_v58, %v494_v54  ;;  %v475_v2 = vrot.slane %v461_v60, %v1655_v56  ;;  %v479_v6 = vrot.slane %v442_v51, 7 }
  0x85   : > { %838 = vmatprep.subr.bf16.mxu1 %v1259_v10  ;;  %v512_v3 = vpack.c.bf16 %v495_v1, %v493_v63  ;;  %v1283_v10 = vld [vmem:[#allocation5 + $0xf4] ss:$8 sps:$4 sm:$0xff]  }
  0x86   : > { %v476_v7 = vcombine.low %v468_v62, %v475_v2  ;;  %v480_v13 = vsel %vm477_vm1, %v478_v5, %v479_v6  ;;  %v482_v19 = vsel %vm477_vm1, %v479_v6, %v481_v18 }
  0x87   : > { %902 = vmatmul.mubr.bf16.vlgmr.msra.gmra.mrb[0].mxu0 %v512_v3  ;;  %v1108_v16 = vpack.c.bf16 %v480_v13, %v478_v5 }
  0x88   : > { %839 = vmatpush1.bf16.msra.mxu1 %v1262_v23  ;;  %911 = vmatprep.mubr.bf16.mxu0 %v1439_v0  ;;  %v496_v11 = vrot.slane %v476_v7, 1  ;;  %v514_v17 = vpack.c.bf16 %v476_v7, %v459_v50  ;;  %v483_v0 = vrot.slane %v476_v7, 7 }
  0x89   : > { %840 = vmatprep.subr.bf16.mxu1 %v1265_v28  ;;  %v569_v28 = vrot.slane %v564_v26, %v1650_v49 }
  0x8a   : > { %v497_v56 = vsel %vm490_vm0, %v494_v54, %v496_v11  ;;  %v505_v14 = vsel %vm490_vm0, %v496_v11, %v503_v9  ;;  %v484_v20 = vsel %vm477_vm1, %v481_v18, %v483_v0 }
  0x8b   : > { %v515_v15 = vpack.c.bf16 %v505_v14, %v497_v56  ;;  %v513_v21 = vpack.c.bf16 %v484_v20, %v482_v19 }
  0x8c   : > { %841 = vmatpush1.bf16.msra.mxu1 %v1268_v43 }
  0x8d   : > { %842 = vmatprep.subr.bf16.mxu1 %v1271_v48 }
  0x8f   : > { %912 = vmatmul.mubr.bf16.gmra.mrb[4].mxu0 %v515_v15 }
  0x90   : > { %843 = vmatpush1.bf16.msra.mxu1 %v1274_v57 }
  0x91   : > { %844 = vmatprep.subr.bf16.mxu1 %v1277_v61 }
  0x94   : > { %845 = vmatpush1.bf16.msra.mxu1 %v1280_v4 }
  0x95   : > { %846 = vmatprep.subr.bf16.mxu1 %v1283_v10 }
  0x98   : > { %847 = vmatpush1.bf16.msra.mxu1 %v1286_v12 }
  0x9b   : > { %1109 = vmatmul.mubr.msk.bf16.vlgmr.msra.gmra.mrb[0].mxu1 %vm1107_vm4, %v1108_v16 }
  0x9c   : > { %858 = vmatprep.mubr.bf16.mxu1 %v514_v17 }
  0xa3   : > { %859 = vmatmul.mubr.bf16.gmra.mrb[4].mxu1 %v513_v21 }
 0x15a   : > { %v903_v22 = vpop.f32.mrb[0].mxu0 }
 0x15b   : > { %v905_v23 = vpop.f32.mrb[1].mxu0 }
 0x15c   : > { %v907_v24 = vpop.f32.mrb[2].mxu0 }
 0x15d   : > { %v909_v25 = vpop.f32.mrb[3].mxu0 }
 0x162   : > { %v913_v31 = vpop.f32.mrb[4].mxu0 }
 0x163   : > { %v915_v32 = vpop.f32.mrb[5].mxu0 }
 0x164   : > { %v917_v34 = vpop.f32.mrb[6].mxu0 }
 0x165   : > { %v919_v38 = vpop.f32.mrb[7].mxu0 }
 0x16e   : > { %v850_v33 = vpop.f32.mrb[0].mxu1 }
 0x16f   : > { %v851_v35 = vadd.f32 %v850_v33, %v569_v28  ;;  %v852_v37 = vpop.f32.mrb[1].mxu1 }
 0x170   : > { %v853_v39 = vadd.f32 %v852_v37, %v573_v30  ;;  %v854_v40 = vpop.f32.mrb[2].mxu1 }
 0x171   : > { %v904_v41 = vadd.f32 %v903_v22, %v851_v35  ;;  %v855_v42 = vadd.f32 %v854_v40, %v569_v28  ;;  %v856_v43 = vpop.f32.mrb[3].mxu1 }
 0x172   : > { %v906_v44 = vadd.f32 %v905_v23, %v853_v39  ;;  %v857_v45 = vadd.f32 %v856_v43, %v573_v30 }
 0x173   : > { %922 = vst [vmem:[%s217_s10] sm:$0xff] %v904_v41  ;;  %v908_v29 = vadd.f32 %v907_v24, %v855_v42 }
 0x174   : > { %923 = vst [vmem:[%s217_s10 + $0x8] sm:$0xff] %v906_v44  ;;  %v910_v49 = vadd.f32 %v909_v25, %v857_v45 }
 0x175   : > { %924 = vst [vmem:[%s217_s10 + $0x10] sm:$0xff] %v908_v29 }
 0x176   : > { %925 = vst [vmem:[%s217_s10 + $0x18] sm:$0xff] %v910_v49  ;;  %v860_v46 = vpop.f32.mrb[4].mxu1 }
 0x177   : > { %v861_v47 = vadd.f32 %v860_v46, %v569_v28  ;;  %v862_v48 = vpop.f32.mrb[5].mxu1 }
 0x178   : > { %v863_v50 = vadd.f32 %v862_v48, %v573_v30  ;;  %v864_v36 = vpop.f32.mrb[6].mxu1 }
 0x179   : > { %v914_v51 = vadd.f32 %v913_v31, %v861_v47  ;;  %v865_v52 = vadd.f32 %v864_v36, %v569_v28  ;;  %v866_v53 = vpop.f32.mrb[7].mxu1 }
 0x17a   : > { %v916_v54 = vadd.f32 %v915_v32, %v863_v50  ;;  %v867_v55 = vadd.f32 %v866_v53, %v573_v30 }
 0x17b   : > { %926 = vst [vmem:[%s217_s10 + $0x20] sm:$0xff] %v914_v51  ;;  %v918_v57 = vadd.f32 %v917_v34, %v865_v52 }
 0x17c   : > { %927 = vst [vmem:[%s217_s10 + $0x28] sm:$0xff] %v916_v54  ;;  %v920_v58 = vadd.f32 %v919_v38, %v867_v55 }
 0x17d   : > { %928 = vst [vmem:[%s217_s10 + $0x30] sm:$0xff] %v918_v57 }
 0x17e   : > { %929 = vst [vmem:[%s217_s10 + $0x38] sm:$0xff] %v920_v58 }
 0x17f   : > { %1360 = shalt.err (!%p1357_p5)
}
 0x180   : > { %s1361_s29 = scalar_lea.hbm %s1710_s25, 1024  ;;  %s1365_s20 = scalar_lea.hbm %s1762_s3, 2048 }
 0x181   : > { %p1362_p9 = scmp.ne.s32.totalorder %s1710_s25, %s1361_s29  ;;  %p1366_p3 = scmp.lt.u32.totalorder %s1710_s25, %s1762_s3 }
 0x182   : > { %p1367_p7 = scmp.lt.u32.totalorder %s1365_s20, %s1361_s29  ;;  %p1369_p4 = scmp.lt.u32.totalorder %s1361_s29, %s1710_s25 }
 0x183   : > { %p1363_p1 = pnand %p1362_p9, %p1566_p10 }
 0x184   : > { %p1368_p13 = por %p1367_p7, %p1366_p3 }
 0x185   : > { %p1364_p2 = pneg %p1363_p1 }
 0x186   : > { %p1370_p6 = por %p1369_p4, %p1368_p13 }
 0x188   : > { %p1371_p8 = pnand %p1370_p6, %p1364_p2 }
 0x18a   : > { %1374 = shalt.err (!%p1371_p8)
}
 0x18b   : > { %s1445_s10 = smov 256   ;;  %s1446_s9 = smov 16  }
 0x18c   : > { %1139 = dma.vmem_to_hbm [thread:$0]  (%p1566_p10), %s1705_s11, 1024, %s1710_s25, %s931_s15, %s1445_s10, %s1445_s10, %s1446_s9  }
 0x18d PF: > { %s962_s18 = sand.u32 1, %s1413_s12   ;;  %p1780_p12 = scmp.ne.s32.totalorder %s1770_s23, 0 }
 0x18e   : > { %p1781_p11 = scmp.ge.s32.totalorder %s1433_s17, 2  ;;  %s963_s19 = scalar_lea.sflag [#allocation4], %s962_s18 }
 0x190   : > { %p1150_p0 = pnand %p1781_p11, %p1780_p12 }
 0x192   : > { %1408 = dma.done.wait (!%p1150_p0), %s963_s19, 1024  }
 0x193   : > { %1410 = vsyncadd (!%p1150_p0), %s963_s19, 4294966272  ;;  %s20_s17 = sadd.s32 1, %s1433_s17   ;;  %s1782_s12 = smov %s1417_s13 }
 0x194   : > { %p17_p5 = scmp.ge.s32.totalorder %s20_s17, 4   ;;  %s1783_s13 = smov %s1421_s14 }
 0x195   : > { %s1784_s14 = smov %s1575_s5  ;;  %s1785_s15 = smov %s1429_s16 }
 0x196   : > { %s1786_s16 = smov %s1788_s28  ;;  %19 = sbr.rel (!%p17_p5) target bundleno = 7 (0x7), region = 84 }
 0x19d   :  { %968 = vsyncpa [#allocation3], 1 }
 0x19e   :  { %970 = vsyncpa [#allocation3 + $0x1], 1 }
 0x19f   :  { %971 = vsyncpa [#allocation6], 1 }
 0x1a0   :  { %972 = vsyncpa [#allocation4], 1 }
 0x1a1   :  { %974 = vsyncpa [#allocation4 + $0x1], 1 }

</bundles_post_ra>
